<compile_context>
chip_gen: v7x
topology: tpu7x:2x2x1
jax: 0.10.0
libtpu: 0.0.40
codegen_flags: <defaults>
</compile_context>

<pallas_src>
import jax
import jax.numpy as jnp
from jax.experimental import pallas as pl
from jax.experimental.pallas import tpu as pltpu

H1 = 256          # fc1 out
H2_PAD = 128      # fc2 out, padded 64 -> 128 (lane-dense)
OUT_PAD = 128     # fc3 out, padded 10 -> 128 (lane-dense)
OUT = 10


def mlp_kernel(x_ref, w1_ref, b1_ref, w2_ref, b2_ref, w3_ref, b3_ref, o_ref):
    # fc1 + relu   (bf16 x bf16 -> f32 accumulate on the MXU)
    h1 = jnp.dot(x_ref[...], w1_ref[...], preferred_element_type=jnp.float32)
    h1 = jnp.maximum(h1 + b1_ref[...], 0.0)
    # fc2 + relu   (padded to 128 lanes; pad columns stay exactly 0 through ReLU)
    h2 = jnp.dot(h1.astype(jnp.bfloat16), w2_ref[...],
                 preferred_element_type=jnp.float32)
    h2 = jnp.maximum(h2 + b2_ref[...], 0.0)
    # fc3 (no activation); padded rows of w3 are zero so they contribute nothing
    o_ref[...] = (jnp.dot(h2.astype(jnp.bfloat16), w3_ref[...],
                          preferred_element_type=jnp.float32)
                  + b3_ref[...])


def preprocess_params(w1, b1, w2, b2, w3, b3):
    """Zero-pad to lane-dense widths and cast matmul operands to bf16 (once)."""
    w2p = jnp.pad(w2, ((0, 0), (0, H2_PAD - w2.shape[1])))
    b2p = jnp.pad(b2, ((0, 0), (0, H2_PAD - b2.shape[1])))
    w3p = jnp.pad(w3, ((0, H2_PAD - w3.shape[0]), (0, OUT_PAD - w3.shape[1])))
    b3p = jnp.pad(b3, ((0, 0), (0, OUT_PAD - b3.shape[1])))
    return (w1.astype(jnp.bfloat16), b1,
            w2p.astype(jnp.bfloat16), b2p,
            w3p.astype(jnp.bfloat16), b3p)


def net_forward(x, packed_params):
    """x: (B, 784) f32.  packed_params: output of preprocess_params."""
    w1, b1, w2, b2, w3, b3 = packed_params
    B, D = x.shape

    # Batch tile: modest (well under the v7x 32 MiB scoped-VMEM default even with
    # double-buffering: TB=128 bf16 activations ~0.2 MiB; weights ~0.5 MiB total).
    TB = 128 if B >= 128 else max(8, B)
    n_blocks = pl.cdiv(B, TB)
    Bp = n_blocks * TB
    if Bp != B:
        x = jnp.pad(x, ((0, Bp - B), (0, 0)))
    x_bf = x.astype(jnp.bfloat16)

    def resident(shape):
        # Constant block index -> weights/biases stay in VMEM across grid steps.
        return pl.BlockSpec(shape, lambda i: tuple(0 for _ in shape))

    out = pl.pallas_call(
        mlp_kernel,
        out_shape=jax.ShapeDtypeStruct((Bp, OUT_PAD), jnp.float32),
        grid=(n_blocks,),
        in_specs=[
            pl.BlockSpec((TB, D), lambda i: (i, 0)),   # x: tiled over batch
            resident(w1.shape), resident(b1.shape),
            resident(w2.shape), resident(b2.shape),
            resident(w3.shape), resident(b3.shape),
        ],
        out_specs=pl.BlockSpec((TB, OUT_PAD), lambda i: (i, 0)),
        compiler_params=pltpu.CompilerParams(
            dimension_semantics=("parallel",)),        # v7x megacore over batch
    )(x_bf, w1, b1, w2, b2, w3, b3)

    # Drop batch padding and the lane padding of the 10-wide logits.
    return out[:B, :OUT]


def init_linear(key, in_features, out_features):
    # Deterministic init mirroring nn.Linear's uniform(-1/sqrt(in), 1/sqrt(in)).
    kw, kb = jax.random.split(key)
    bound = 1.0 / jnp.sqrt(jnp.float32(in_features))
    # stored as (in, out) so the kernel does x @ W  (== x @ W_torch.T)
    w = jax.random.uniform(kw, (in_features, out_features), jnp.float32, -bound, bound)
    b = jax.random.uniform(kb, (1, out_features), jnp.float32, -bound, bound)
    return w, b


def ref_forward(x, raw_params):
    # Pure-JAX reference with the same bf16-operand / f32-accumulate precision.
    w1, b1, w2, b2, w3, b3 = raw_params
    bf = jnp.bfloat16
    h1 = jnp.dot(x.astype(bf), w1.astype(bf), preferred_element_type=jnp.float32) + b1
    h1 = jnp.maximum(h1, 0.0)
    h2 = jnp.dot(h1.astype(bf), w2.astype(bf), preferred_element_type=jnp.float32) + b2
    h2 = jnp.maximum(h2, 0.0)
    return jnp.dot(h2.astype(bf), w3.astype(bf), preferred_element_type=jnp.float32) + b3


if __name__ == "__main__":
    key = jax.random.PRNGKey(0)
    k_x, k1, k2, k3 = jax.random.split(key, 4)

    B = 64
    x = jax.random.normal(k_x, (B, 784), jnp.float32)

    w1, b1 = init_linear(k1, 784, 256)
    w2, b2 = init_linear(k2, 256, 64)
    w3, b3 = init_linear(k3, 64, 10)
    raw_params = (w1, b1, w2, b2, w3, b3)
    packed = preprocess_params(*raw_params)

    out = net_forward(x, packed)
    out = jax.block_until_ready(out)

    ref = ref_forward(x, raw_params)
    assert out.shape == (B, 10)
    assert jnp.allclose(out, ref, atol=1e-2, rtol=1e-2), (
        float(jnp.max(jnp.abs(out - ref))))

    print("KERNEL_OK")
</pallas_src>

<mosaic_0001>
module attributes {stable_mosaic.version = 11 : i64} {
  func.func @mlp_kernel(%arg0: i32, %arg1: memref<64x784xbf16, #tpu.memory_space<vmem>>, %arg2: memref<784x256xbf16, #tpu.memory_space<vmem>>, %arg3: memref<1x256xf32, #tpu.memory_space<vmem>>, %arg4: memref<256x128xbf16, #tpu.memory_space<vmem>>, %arg5: memref<1x128xf32, #tpu.memory_space<vmem>>, %arg6: memref<128x128xbf16, #tpu.memory_space<vmem>>, %arg7: memref<1x128xf32, #tpu.memory_space<vmem>>, %arg8: memref<64x128xf32, #tpu.memory_space<vmem>>) attributes {dimension_semantics = [#tpu.dimension_semantics<parallel>], iteration_bounds = array<i64: 1>, scalar_prefetch = 0 : i64, scratch_operands = 0 : i64, tpu.core_type = #tpu.core_type<tc>, window_params = [{transform_indices = @transform_0, window_bounds = array<i64: 64, 784>}, {pipeline_mode = #tpu.pipeline_mode<synchronous>, transform_indices = @transform_1, window_bounds = array<i64: 784, 256>}, {pipeline_mode = #tpu.pipeline_mode<synchronous>, transform_indices = @transform_2, window_bounds = array<i64: 1, 256>}, {pipeline_mode = #tpu.pipeline_mode<synchronous>, transform_indices = @transform_3, window_bounds = array<i64: 256, 128>}, {pipeline_mode = #tpu.pipeline_mode<synchronous>, transform_indices = @transform_4, window_bounds = array<i64: 1, 128>}, {pipeline_mode = #tpu.pipeline_mode<synchronous>, transform_indices = @transform_5, window_bounds = array<i64: 128, 128>}, {pipeline_mode = #tpu.pipeline_mode<synchronous>, transform_indices = @transform_6, window_bounds = array<i64: 1, 128>}, {transform_indices = @transform_7, window_bounds = array<i64: 64, 128>}]} {
    %c0 = arith.constant 0 : index
    %c0_0 = arith.constant 0 : index
    %0 = vector.load %arg1[%c0, %c0_0] : memref<64x784xbf16, #tpu.memory_space<vmem>>, vector<64x784xbf16>
    %c0_1 = arith.constant 0 : index
    %c0_2 = arith.constant 0 : index
    %1 = vector.load %arg2[%c0_1, %c0_2] : memref<784x256xbf16, #tpu.memory_space<vmem>>, vector<784x256xbf16>
    %cst = arith.constant dense<0.000000e+00> : vector<64x256xf32>
    %2 = tpu.matmul %0, %1, %cst {dimension_numbers = #tpu.dot_dimension_numbers<[1], [0], [0], [1], [0, 0, 1, 1], [], []>} : vector<64x784xbf16>, vector<784x256xbf16>, vector<64x256xf32> -> vector<64x256xf32>
    %c0_3 = arith.constant 0 : index
    %c0_4 = arith.constant 0 : index
    %3 = vector.load %arg3[%c0_3, %c0_4] : memref<1x256xf32, #tpu.memory_space<vmem>>, vector<1x256xf32>
    %4 = vector.broadcast %3 : vector<1x256xf32> to vector<64x256xf32>
    %5 = arith.addf %2, %4 : vector<64x256xf32>
    %cst_5 = arith.constant 0.000000e+00 : f32
    %6 = vector.broadcast %cst_5 : f32 to vector<64x256xf32>
    %7 = arith.maximumf %5, %6 : vector<64x256xf32>
    %8 = arith.truncf %7 : vector<64x256xf32> to vector<64x256xbf16>
    %c0_6 = arith.constant 0 : index
    %c0_7 = arith.constant 0 : index
    %9 = vector.load %arg4[%c0_6, %c0_7] : memref<256x128xbf16, #tpu.memory_space<vmem>>, vector<256x128xbf16>
    %cst_8 = arith.constant dense<0.000000e+00> : vector<64x128xf32>
    %10 = tpu.matmul %8, %9, %cst_8 {dimension_numbers = #tpu.dot_dimension_numbers<[1], [0], [0], [1], [0, 0, 1, 1], [], []>} : vector<64x256xbf16>, vector<256x128xbf16>, vector<64x128xf32> -> vector<64x128xf32>
    %c0_9 = arith.constant 0 : index
    %c0_10 = arith.constant 0 : index
    %11 = vector.load %arg5[%c0_9, %c0_10] : memref<1x128xf32, #tpu.memory_space<vmem>>, vector<1x128xf32>
    %12 = vector.broadcast %11 : vector<1x128xf32> to vector<64x128xf32>
    %13 = arith.addf %10, %12 : vector<64x128xf32>
    %cst_11 = arith.constant 0.000000e+00 : f32
    %14 = vector.broadcast %cst_11 : f32 to vector<64x128xf32>
    %15 = arith.maximumf %13, %14 : vector<64x128xf32>
    %16 = arith.truncf %15 : vector<64x128xf32> to vector<64x128xbf16>
    %c0_12 = arith.constant 0 : index
    %c0_13 = arith.constant 0 : index
    %17 = vector.load %arg6[%c0_12, %c0_13] : memref<128x128xbf16, #tpu.memory_space<vmem>>, vector<128x128xbf16>
    %cst_14 = arith.constant dense<0.000000e+00> : vector<64x128xf32>
    %18 = tpu.matmul %16, %17, %cst_14 {dimension_numbers = #tpu.dot_dimension_numbers<[1], [0], [0], [1], [0, 0, 1, 1], [], []>} : vector<64x128xbf16>, vector<128x128xbf16>, vector<64x128xf32> -> vector<64x128xf32>
    %c0_15 = arith.constant 0 : index
    %c0_16 = arith.constant 0 : index
    %19 = vector.load %arg7[%c0_15, %c0_16] : memref<1x128xf32, #tpu.memory_space<vmem>>, vector<1x128xf32>
    %20 = vector.broadcast %19 : vector<1x128xf32> to vector<64x128xf32>
    %21 = arith.addf %18, %20 : vector<64x128xf32>
    %c0_17 = arith.constant 0 : index
    %c0_18 = arith.constant 0 : index
    %22 = vector.load %arg8[%c0_17, %c0_18] : memref<64x128xf32, #tpu.memory_space<vmem>>, vector<64x128xf32>
    tpu.vector_store %arg8[%c0_17, %c0_18], %21 {strides = array<i32>} : memref<64x128xf32, #tpu.memory_space<vmem>>, vector<64x128xf32>,
    return
  }
  func.func @transform_0(%arg0: i32) -> (i32, i32) {
    %c0_i32 = arith.constant 0 : i32
    %c0_i32_0 = arith.constant 0 : i32
    return %arg0, %c0_i32 : i32, i32
  }
  func.func @transform_1(%arg0: i32) -> (i32, i32) {
    %c0_i32 = arith.constant 0 : i32
    %c0_i32_0 = arith.constant 0 : i32
    %c0_i32_1 = arith.constant 0 : i32
    return %c0_i32, %c0_i32_0 : i32, i32
  }
  func.func @transform_2(%arg0: i32) -> (i32, i32) {
    %c0_i32 = arith.constant 0 : i32
    %c0_i32_0 = arith.constant 0 : i32
    %c0_i32_1 = arith.constant 0 : i32
    return %c0_i32, %c0_i32_0 : i32, i32
  }
  func.func @transform_3(%arg0: i32) -> (i32, i32) {
    %c0_i32 = arith.constant 0 : i32
    %c0_i32_0 = arith.constant 0 : i32
    %c0_i32_1 = arith.constant 0 : i32
    return %c0_i32, %c0_i32_0 : i32, i32
  }
  func.func @transform_4(%arg0: i32) -> (i32, i32) {
    %c0_i32 = arith.constant 0 : i32
    %c0_i32_0 = arith.constant 0 : i32
    %c0_i32_1 = arith.constant 0 : i32
    return %c0_i32, %c0_i32_0 : i32, i32
  }
  func.func @transform_5(%arg0: i32) -> (i32, i32) {
    %c0_i32 = arith.constant 0 : i32
    %c0_i32_0 = arith.constant 0 : i32
    %c0_i32_1 = arith.constant 0 : i32
    return %c0_i32, %c0_i32_0 : i32, i32
  }
  func.func @transform_6(%arg0: i32) -> (i32, i32) {
    %c0_i32 = arith.constant 0 : i32
    %c0_i32_0 = arith.constant 0 : i32
    %c0_i32_1 = arith.constant 0 : i32
    return %c0_i32, %c0_i32_0 : i32, i32
  }
  func.func @transform_7(%arg0: i32) -> (i32, i32) {
    %c0_i32 = arith.constant 0 : i32
    %c0_i32_0 = arith.constant 0 : i32
    return %arg0, %c0_i32 : i32, i32
  }
}

</mosaic_0001>

<bundles_post_ra>
// kernel: tpu_custom_call.1
= control target key start
LH: loop header
LB: loop body
LE: loop exit
PB: predicated region body
PF: predicated region fallthrough
CT: control target
= control target key end

     0   :  { %12 = vsyncpa [#allocation3], 0  ;;  %s2429_s0 = inlined_call_operand.hbm [shape: bf16[64,784], index: 0, kind: input, shape index: {}]   ;;  %s2430_s1 = inlined_call_operand.hbm [shape: bf16[784,256], index: 1, kind: input, shape index: {}]   ;;  %s2431_s2 = inlined_call_operand.vmem [shape: f32[1,256], index: 2, kind: input, shape index: {}]   ;;  %s2432_s3 = inlined_call_operand.hbm [shape: bf16[256,128], index: 3, kind: input, shape index: {}]   ;;  %s2433_s4 = inlined_call_operand.vmem [shape: f32[1,128], index: 4, kind: input, shape index: {}]   ;;  %s2434_s5 = inlined_call_operand.hbm [shape: bf16[128,128], index: 5, kind: input, shape index: {}]   ;;  %s2435_s6 = inlined_call_operand.vmem [shape: f32[1,128], index: 6, kind: input, shape index: {}]   ;;  %s2436_s7 = inlined_call_operand.hbm [shape: f32[64,128], index: 7, kind: output, shape index: {}]  }
   0x1   :  { %13 = vsyncpa [#allocation6], 0 }
   0x2   :  { %14 = vsyncpa [#allocation9], 0 }
   0x3   :  { %15 = vsyncpa [#allocation4], 0  ;;  %s2212_s24 = smov [#allocation5]   ;;  %s2094_s28 = scalar_lea.hbm %s2430_s1, 12544 }
   0x4   :  { %s33_s25 = sshll.u32 %s2212_s24, 4  ;;  %p2095_p0 = scmp.ne.s32.totalorder %s2430_s1, %s2094_s28  ;;  %s34_s25 = int_to_ptr.vmem [resolvable:$true] %s33_s25 }
   0x5   :  { %p2098_p1 = scmp.lt.u32.totalorder %s2094_s28, %s2430_s1 }
   0x7   :  { %p2100_p2 = pnand %p2098_p1, %p2095_p0 }
   0x9   :  { %2103 = shalt.err (!%p2100_p2)
}
   0xa   :  { %s2104_s10 = scalar_lea.vmem %s34_s25, 12544  ;;  %p2109_p4 = scmp.lt.s32.totalorder %s34_s25, %s34_s25 }
   0xb   :  { %p2105_p3 = scmp.ne.s32.totalorder %s34_s25, %s2104_s10  ;;  %p2110_p5 = scmp.lt.s32.totalorder %s2104_s10, %s2104_s10 }
   0xd   :  { %p2111_p6 = por %p2110_p5, %p2109_p4 }
   0xf   :  { %p2112_p7 = pnand %p2111_p6, %p2105_p3 }
  0x11   :  { %2115 = shalt.err (!%p2112_p7)
}
  0x12   :  { %s2213_s11 = smov 128   ;;  %s2214_s12 = smov 8  }
  0x13   :  { %39 = dma.hbm_to_vmem [thread:$0]  %s2430_s1, 12544, %s34_s25, [#allocation6], %s2213_s11, %s2213_s11, %s2214_s12  }
  0x14   :  { %s2215_s15 = smov [#allocation2]   ;;  %s2116_s19 = scalar_lea.hbm %s2429_s0, 3584 }
  0x15   :  { %s21_s16 = sshll.u32 %s2215_s15, 4  ;;  %p2117_p8 = scmp.ne.s32.totalorder %s2429_s0, %s2116_s19  ;;  %s22_s16 = int_to_ptr.vmem [resolvable:$true] %s21_s16 }
  0x16   :  { %p2120_p9 = scmp.lt.u32.totalorder %s2116_s19, %s2429_s0 }
  0x18   :  { %p2122_p10 = pnand %p2120_p9, %p2117_p8 }
  0x1a   :  { %2125 = shalt.err (!%p2122_p10)
}
  0x1b   :  { %s2126_s24 = scalar_lea.vmem %s22_s16, 3584  ;;  %p2131_p12 = scmp.lt.s32.totalorder %s22_s16, %s22_s16 }
  0x1c   :  { %p2127_p11 = scmp.ne.s32.totalorder %s22_s16, %s2126_s24  ;;  %p2132_p13 = scmp.lt.s32.totalorder %s2126_s24, %s2126_s24 }
  0x1e   :  { %p2133_p0 = por %p2132_p13, %p2131_p12 }
  0x20   :  { %p2134_p1 = pnand %p2133_p0, %p2127_p11 }
  0x22   :  { %2137 = shalt.err (!%p2134_p1)
}
  0x23   :  { %s2216_s1 = smov 448   ;;  %s2217_s25 = smov 28  }
  0x24   :  { %27 = dma.hbm_to_vmem [thread:$0]  %s2429_s0, 3584, %s22_s16, [#allocation3], %s2216_s1, %s2216_s1, %s2217_s25  }
  0x25   :  { %s2218_s28 = smov [#allocation7]   ;;  %s2138_s9 = scalar_lea.hbm %s2432_s3, 2048 }
  0x26   :  { %s47_s29 = sshll.u32 %s2218_s28, 4  ;;  %p2139_p2 = scmp.ne.s32.totalorder %s2432_s3, %s2138_s9  ;;  %s48_s29 = int_to_ptr.vmem [resolvable:$true] %s47_s29 }
  0x27   :  { %p2142_p3 = scmp.lt.u32.totalorder %s2138_s9, %s2432_s3 }
  0x29   :  { %p2144_p4 = pnand %p2142_p3, %p2139_p2 }
  0x2b   :  { %2147 = shalt.err (!%p2144_p4)
}
  0x2c   :  { %s2148_s17 = scalar_lea.vmem %s48_s29, 2048  ;;  %p2153_p6 = scmp.lt.s32.totalorder %s48_s29, %s48_s29 }
  0x2d   :  { %p2149_p5 = scmp.ne.s32.totalorder %s48_s29, %s2148_s17  ;;  %p2154_p7 = scmp.lt.s32.totalorder %s2148_s17, %s2148_s17 }
  0x2f   :  { %p2155_p8 = por %p2154_p7, %p2153_p6 }
  0x31   :  { %p2156_p9 = pnand %p2155_p8, %p2149_p5 }
  0x33   :  { %2159 = shalt.err (!%p2156_p9)
}
  0x34   :  { %s2219_s0 = smov 64   ;;  %s2220_s16 = smov 4  }
  0x35   :  { %53 = dma.hbm_to_vmem [thread:$0]  %s2432_s3, 2048, %s48_s29, [#allocation6], %s2219_s0, %s2219_s0, %s2220_s16  }
  0x36   :  { %s2221_s20 = smov [#allocation8]   ;;  %s2160_s24 = scalar_lea.hbm %s2434_s5, 1024 }
  0x37   :  { %s61_s21 = sshll.u32 %s2221_s20, 4  ;;  %p2161_p10 = scmp.ne.s32.totalorder %s2434_s5, %s2160_s24  ;;  %s62_s21 = int_to_ptr.vmem [resolvable:$true] %s61_s21 }
  0x38   :  { %p2164_p11 = scmp.lt.u32.totalorder %s2160_s24, %s2434_s5 }
  0x3a   :  { %p2166_p12 = pnand %p2164_p11, %p2161_p10 }
  0x3c   :  { %2169 = shalt.err (!%p2166_p12)
}
  0x3d   :  { %s2170_s28 = scalar_lea.vmem %s62_s21, 1024  ;;  %p2175_p0 = scmp.lt.s32.totalorder %s62_s21, %s62_s21 }
  0x3e   :  { %p2171_p13 = scmp.ne.s32.totalorder %s62_s21, %s2170_s28  ;;  %p2176_p1 = scmp.lt.s32.totalorder %s2170_s28, %s2170_s28 }
  0x40   :  { %p2177_p2 = por %p2176_p1, %p2175_p0 }
  0x42   :  { %p2178_p3 = pnand %p2177_p2, %p2171_p13 }
  0x44   :  { %2181 = shalt.err (!%p2178_p3)
}
  0x45   :  { %67 = dma.hbm_to_vmem [thread:$0]  %s2434_s5, 1024, %s62_s21, [#allocation9], %s2219_s0, %s2219_s0, %s2220_s16  }
  0x46   :  { %2204 = dma.done.wait [#allocation3], 3584  }
  0x47   :  { %2205 = vsyncadd [#allocation3], 4294963712 }
  0x48   :  { %2206 = dma.done.wait [#allocation6], 14592  }
  0x49   :  { %2207 = vsyncadd [#allocation6], 4294952704 }
  0x4a   :  { %2208 = dma.done.wait [#allocation9], 1024  }
  0x4b   :  { %2209 = vsyncadd [#allocation9], 4294966272  ;;  %v1883_v0 = vld [vmem:[#allocation5 + $0x104] ss:$8 sps:$4 sm:$0xff]   ;;  %v1885_v1 = vld [vmem:[#allocation5 + $0x100] ss:$8 sps:$4 sm:$0xff]  }
  0x4c   :  { %941 = vmatprep.subr.bf16.mxu0 %v1883_v0  ;;  %v1886_v2 = vld [vmem:[#allocation5 + $0x114] ss:$8 sps:$4 sm:$0xff]   ;;  %v1888_v3 = vld [vmem:[#allocation5 + $0x110] ss:$8 sps:$4 sm:$0xff]   ;;  %v1889_v4 = vld [vmem:[#allocation5 + $0x124] ss:$8 sps:$4 sm:$0xff]  }
  0x4d   :  { %942 = vmatpush1.bf16.msra.mxu0 %v1885_v1  ;;  %v1891_v5 = vld [vmem:[#allocation5 + $0x120] ss:$8 sps:$4 sm:$0xff]   ;;  %v1892_v6 = vld [vmem:[#allocation5 + $0x134] ss:$8 sps:$4 sm:$0xff]   ;;  %v1894_v7 = vld [vmem:[#allocation5 + $0x130] ss:$8 sps:$4 sm:$0xff]  }
  0x4e   :  { %943 = vmatprep.subr.bf16.mxu0 %v1886_v2  ;;  %v1907_v8 = vld [vmem:[#allocation5 + $0x4] ss:$8 sps:$4 sm:$0xff]   ;;  %v1909_v9 = vld [vmem:[#allocation5] ss:$8 sps:$4 sm:$0xff]   ;;  %v1913_v11 = vld [vmem:[#allocation5 + $0x14] ss:$8 sps:$4 sm:$0xff]  }
  0x4f   :  { %v1895_v10 = vld [vmem:[#allocation5 + $0x144] ss:$8 sps:$4 sm:$0xff]   ;;  %868 = vmatprep.subr.bf16.mxu1 %v1907_v8  ;;  %v1915_v12 = vld [vmem:[#allocation5 + $0x10] ss:$8 sps:$4 sm:$0xff]   ;;  %v1897_v13 = vld [vmem:[#allocation5 + $0x140] ss:$8 sps:$4 sm:$0xff]  }
  0x50   :  { %869 = vmatpush1.bf16.msra.mxu1 %v1909_v9  ;;  %v1898_v14 = vld [vmem:[#allocation5 + $0x154] ss:$8 sps:$4 sm:$0xff]   ;;  %v1919_v15 = vld [vmem:[#allocation5 + $0x24] ss:$8 sps:$4 sm:$0xff]   ;;  %v1921_v16 = vld [vmem:[#allocation5 + $0x20] ss:$8 sps:$4 sm:$0xff]  }
  0x51   :  { %944 = vmatpush1.bf16.msra.mxu0 %v1888_v3  ;;  %870 = vmatprep.subr.bf16.mxu1 %v1913_v11  ;;  %v1900_v17 = vld [vmem:[#allocation5 + $0x150] ss:$8 sps:$4 sm:$0xff]   ;;  %v1925_v18 = vld [vmem:[#allocation5 + $0x34] ss:$8 sps:$4 sm:$0xff]   ;;  %v1901_v19 = vld [vmem:[#allocation5 + $0x164] ss:$8 sps:$4 sm:$0xff]  }
  0x52   :  { %945 = vmatprep.subr.bf16.mxu0 %v1889_v4  ;;  %v1927_v20 = vld [vmem:[#allocation5 + $0x30] ss:$8 sps:$4 sm:$0xff]   ;;  %v1903_v21 = vld [vmem:[#allocation5 + $0x160] ss:$8 sps:$4 sm:$0xff]   ;;  %v1931_v22 = vld [vmem:[#allocation5 + $0x44] ss:$8 sps:$4 sm:$0xff]  }
  0x53   :  { %v1904_v23 = vld [vmem:[#allocation5 + $0x174] ss:$8 sps:$4 sm:$0xff]   ;;  %v1933_v24 = vld [vmem:[#allocation5 + $0x40] ss:$8 sps:$4 sm:$0xff]   ;;  %v1906_v25 = vld [vmem:[#allocation5 + $0x170] ss:$8 sps:$4 sm:$0xff]  }
  0x54   :  { %871 = vmatpush1.bf16.msra.mxu1 %v1915_v12  ;;  %v1937_v26 = vld [vmem:[#allocation5 + $0x54] ss:$8 sps:$4 sm:$0xff]   ;;  %v1910_v27 = vld [vmem:[#allocation5 + $0x184] ss:$8 sps:$4 sm:$0xff]   ;;  %v1939_v28 = vld [vmem:[#allocation5 + $0x50] ss:$8 sps:$4 sm:$0xff]  }
  0x55   :  { %946 = vmatpush1.bf16.msra.mxu0 %v1891_v5  ;;  %872 = vmatprep.subr.bf16.mxu1 %v1919_v15  ;;  %v1912_v29 = vld [vmem:[#allocation5 + $0x180] ss:$8 sps:$4 sm:$0xff]   ;;  %v1943_v30 = vld [vmem:[#allocation5 + $0x64] ss:$8 sps:$4 sm:$0xff]   ;;  %v1916_v31 = vld [vmem:[#allocation5 + $0x194] ss:$8 sps:$4 sm:$0xff]  }
  0x56   :  { %947 = vmatprep.subr.bf16.mxu0 %v1892_v6  ;;  %v1945_v32 = vld [vmem:[#allocation5 + $0x60] ss:$8 sps:$4 sm:$0xff]   ;;  %v1918_v34 = vld [vmem:[#allocation5 + $0x190] ss:$8 sps:$4 sm:$0xff]   ;;  %v1949_v35 = vld [vmem:[#allocation5 + $0x74] ss:$8 sps:$4 sm:$0xff]  }
  0x57   :  { %v1960_v33 = vld [vmem:[#allocation2 + $0xc] ss:$28 sps:$4 sm:$0xff]   ;;  %v1951_v37 = vld [vmem:[#allocation5 + $0x70] ss:$8 sps:$4 sm:$0xff]   ;;  %v1928_v40 = vld [vmem:[#allocation5 + $0x1b4] ss:$8 sps:$4 sm:$0xff]  }
  0x58   :  { %873 = vmatpush1.bf16.msra.mxu1 %v1921_v16  ;;  %v1922_v36 = vld [vmem:[#allocation5 + $0x1a4] ss:$8 sps:$4 sm:$0xff]   ;;  %973 = vmatprep.mubr.bf16.mxu0 %v1960_v33  ;;  %v1924_v38 = vld [vmem:[#allocation5 + $0x1a0] ss:$8 sps:$4 sm:$0xff]   ;;  %v1930_v42 = vld [vmem:[#allocation5 + $0x1b0] ss:$8 sps:$4 sm:$0xff]  }
  0x59   :  { %948 = vmatpush1.bf16.msra.mxu0 %v1894_v7  ;;  %874 = vmatprep.subr.bf16.mxu1 %v1925_v18  ;;  %v1955_v39 = vld [vmem:[#allocation5 + $0x84] ss:$8 sps:$4 sm:$0xff]   ;;  %v1957_v41 = vld [vmem:[#allocation5 + $0x80] ss:$8 sps:$4 sm:$0xff]   ;;  %v1964_v43 = vld [vmem:[#allocation5 + $0x94] ss:$8 sps:$4 sm:$0xff]  }
  0x5a   :  { %949 = vmatprep.subr.bf16.mxu0 %v1895_v10  ;;  %v1934_v44 = vld [vmem:[#allocation5 + $0x1c4] ss:$8 sps:$4 sm:$0xff]   ;;  %v1966_v45 = vld [vmem:[#allocation5 + $0x90] ss:$8 sps:$4 sm:$0xff]   ;;  %v1936_v46 = vld [vmem:[#allocation5 + $0x1c0] ss:$8 sps:$4 sm:$0xff]  }
  0x5b   :  { %v1970_v47 = vld [vmem:[#allocation5 + $0xa4] ss:$8 sps:$4 sm:$0xff]   ;;  %v1940_v48 = vld [vmem:[#allocation5 + $0x1d4] ss:$8 sps:$4 sm:$0xff]   ;;  %v1972_v49 = vld [vmem:[#allocation5 + $0xa0] ss:$8 sps:$4 sm:$0xff]  }
  0x5c   :  { %875 = vmatpush1.bf16.msra.mxu1 %v1927_v20  ;;  %v1942_v50 = vld [vmem:[#allocation5 + $0x1d0] ss:$8 sps:$4 sm:$0xff]   ;;  %v1976_v51 = vld [vmem:[#allocation5 + $0xb4] ss:$8 sps:$4 sm:$0xff]   ;;  %v1946_v52 = vld [vmem:[#allocation5 + $0x1e4] ss:$8 sps:$4 sm:$0xff]  }
  0x5d   :  { %950 = vmatpush1.bf16.msra.mxu0 %v1897_v13  ;;  %876 = vmatprep.subr.bf16.mxu1 %v1931_v22  ;;  %v1948_v53 = vld [vmem:[#allocation5 + $0x1e0] ss:$8 sps:$4 sm:$0xff]   ;;  %v1978_v54 = vld [vmem:[#allocation5 + $0xb0] ss:$8 sps:$4 sm:$0xff]   ;;  %v1982_v55 = vld [vmem:[#allocation5 + $0xc4] ss:$8 sps:$4 sm:$0xff]  }
  0x5e   :  { %951 = vmatprep.subr.bf16.mxu0 %v1898_v14  ;;  %v2008_v56 = vld [vmem:[#allocation2 + $0x4] ss:$28 sps:$4 sm:$0xff]   ;;  %v1952_v57 = vld [vmem:[#allocation5 + $0x1f4] ss:$8 sps:$4 sm:$0xff]   ;;  %v1954_v59 = vld [vmem:[#allocation5 + $0x1f0] ss:$8 sps:$4 sm:$0xff]  }
  0x5f   :  { %900 = vmatprep.mubr.bf16.mxu1 %v2008_v56  ;;  %v1984_v58 = vld [vmem:[#allocation5 + $0xc0] ss:$8 sps:$4 sm:$0xff]   ;;  %v1988_v60 = vld [vmem:[#allocation5 + $0xd4] ss:$8 sps:$4 sm:$0xff]   ;;  %v1963_v61 = vld [vmem:[#allocation5 + $0x204] ss:$8 sps:$4 sm:$0xff]  }
  0x60   :  { %877 = vmatpush1.bf16.msra.mxu1 %v1933_v24  ;;  %v1958_v62 = vld [vmem:[#allocation2 + $0x8] ss:$28 sps:$4 sm:$0xff]   ;;  %v1990_v0 = vld [vmem:[#allocation5 + $0xd0] ss:$8 sps:$4 sm:$0xff]   ;;  %v1969_v1 = vld [vmem:[#allocation5 + $0x214] ss:$8 sps:$4 sm:$0xff]  }
  0x61   :  { %952 = vmatpush1.bf16.msra.mxu0 %v1900_v17  ;;  %878 = vmatprep.subr.bf16.mxu1 %v1937_v26  ;;  %v1961_v63 = vld [vmem:[#allocation5 + $0x200] ss:$8 sps:$4 sm:$0xff]   ;;  %v1994_v2 = vld [vmem:[#allocation5 + $0xe4] ss:$8 sps:$4 sm:$0xff]   ;;  %v1967_v5 = vld [vmem:[#allocation5 + $0x210] ss:$8 sps:$4 sm:$0xff]  }
  0x62   :  { %953 = vmatprep.subr.bf16.mxu0 %v1901_v19  ;;  %v2021_v3 = vld [vmem:[#allocation2 + $0x44] ss:$28 sps:$4 sm:$0xff]   ;;  %v2000_v6 = vld [vmem:[#allocation5 + $0xf4] ss:$8 sps:$4 sm:$0xff]   ;;  %v2002_v9 = vld [vmem:[#allocation5 + $0xf0] ss:$8 sps:$4 sm:$0xff]  }
  0x63   :  { %v1996_v4 = vld [vmem:[#allocation5 + $0xe0] ss:$8 sps:$4 sm:$0xff]   ;;  %v1975_v7 = vld [vmem:[#allocation5 + $0x224] ss:$8 sps:$4 sm:$0xff]   ;;  %v1981_v11 = vld [vmem:[#allocation5 + $0x234] ss:$8 sps:$4 sm:$0xff]  }
  0x64   :  { %879 = vmatpush1.bf16.msra.mxu1 %v1939_v28  ;;  %v1973_v8 = vld [vmem:[#allocation5 + $0x220] ss:$8 sps:$4 sm:$0xff]   ;;  %v2014_v12 = vld [vmem:[#allocation5 + $0x304] ss:$8 sps:$4 sm:$0xff]   ;;  %v2033_v13 = vld [vmem:[#allocation2 + $0x7c] ss:$28 sps:$4 sm:$0xff]  }
  0x65   :  { %954 = vmatpush1.bf16.msra.mxu0 %v1903_v21  ;;  %880 = vmatprep.subr.bf16.mxu1 %v1943_v30  ;;  %v2023_v10 = vld [vmem:[#allocation2 + $0x40] ss:$28 sps:$4 sm:$0xff]   ;;  %v1979_v17 = vld [vmem:[#allocation5 + $0x230] ss:$8 sps:$4 sm:$0xff]   ;;  %v1987_v18 = vld [vmem:[#allocation5 + $0x244] ss:$8 sps:$4 sm:$0xff]  }
  0x66   :  { %955 = vmatprep.subr.bf16.mxu0 %v1904_v23  ;;  %v2006_v14 = vld [vmem:[#allocation2] ss:$28 sps:$4 sm:$0xff]   ;;  %v2035_v20 = vld [vmem:[#allocation2 + $0x78] ss:$28 sps:$4 sm:$0xff]   ;;  %v1999_v26 = vld [vmem:[#allocation5 + $0x264] ss:$8 sps:$4 sm:$0xff]  }
  0x67   :  { %v2012_v15 = vld [vmem:[#allocation5 + $0x300] ss:$8 sps:$4 sm:$0xff]   ;;  %v2018_v16 = vld [vmem:[#allocation2 + $0x3c] ss:$28 sps:$4 sm:$0xff]   ;;  %v2045_v21 = vld [vmem:[#allocation2 + $0xb4] ss:$28 sps:$4 sm:$0xff]  }
  0x68   :  { %881 = vmatpush1.bf16.msra.mxu1 %v1945_v32  ;;  %v1985_v19 = vld [vmem:[#allocation5 + $0x240] ss:$8 sps:$4 sm:$0xff]   ;;  %v1993_v22 = vld [vmem:[#allocation5 + $0x254] ss:$8 sps:$4 sm:$0xff]   ;;  %v2047_v28 = vld [vmem:[#allocation2 + $0xb0] ss:$28 sps:$4 sm:$0xff]  }
  0x69   :  { %956 = vmatpush1.bf16.msra.mxu0 %v1906_v25  ;;  %882 = vmatprep.subr.bf16.mxu1 %v1949_v35  ;;  %v2020_v23 = vld [vmem:[#allocation2 + $0x38] ss:$28 sps:$4 sm:$0xff]   ;;  %v2042_v32 = vld [vmem:[#allocation2 + $0xac] ss:$28 sps:$4 sm:$0xff]   ;;  %vm855_vm0 = vcmask 130048   ;;  %s2223_s10 = smov [#allocation10]  }
  0x6a   :  { %957 = vmatprep.subr.bf16.mxu0 %v1910_v27  ;;  %v2030_v24 = vld [vmem:[#allocation2 + $0x74] ss:$28 sps:$4 sm:$0xff]   ;;  %v1997_v27 = vld [vmem:[#allocation5 + $0x260] ss:$8 sps:$4 sm:$0xff]   ;;  %s1545_s13 = sshll.u32 %s2223_s10, 4  ;;  %s1546_s13 = int_to_ptr.vmem [resolvable:$true] %s1545_s13 }
  0x6b   :  { %v1991_v25 = vld [vmem:[#allocation5 + $0x250] ss:$8 sps:$4 sm:$0xff]   ;;  %v2005_v30 = vld [vmem:[#allocation5 + $0x274] ss:$8 sps:$4 sm:$0xff]   ;;  %v2009_v35 = vld [vmem:[#allocation5 + $0x280] ss:$8 sps:$4 sm:$0xff]   ;;  %p2187_p5 = scmp.lt.s32.totalorder %s1546_s13, %s1546_s13 }
  0x6c   :  { %883 = vmatpush1.bf16.msra.mxu1 %v1951_v37  ;;  %v2003_v33 = vld [vmem:[#allocation5 + $0x270] ss:$8 sps:$4 sm:$0xff]   ;;  %v2044_v37 = vld [vmem:[#allocation2 + $0xa8] ss:$28 sps:$4 sm:$0xff]  }
  0x6d   :  { %958 = vmatpush1.bf16.msra.mxu0 %v1912_v29  ;;  %884 = vmatprep.subr.bf16.mxu1 %v1955_v39  ;;  %v2056_v29 = vld [vmem:[#allocation2 + $0x14] ss:$28 sps:$4 sm:$0xff]   ;;  %v2026_v39 = vld [vmem:[#allocation5 + $0x2a4] ss:$8 sps:$4 sm:$0xff]  }
  0x6e   :  { %959 = vmatprep.subr.bf16.mxu0 %v1916_v31  ;;  %v2032_v31 = vld [vmem:[#allocation2 + $0x70] ss:$28 sps:$4 sm:$0xff]  }
  0x6f   :  { %v2058_v56 = vld [vmem:[#allocation2 + $0x4c] ss:$28 sps:$4 sm:$0xff]  }
  0x70   :  { %885 = vmatpush1.bf16.msra.mxu1 %v1957_v41  ;;  %v2024_v41 = vld [vmem:[#allocation5 + $0x2a0] ss:$8 sps:$4 sm:$0xff]  }
  0x71   :  { %960 = vmatpush1.bf16.msra.mxu0 %v1918_v34  ;;  %886 = vmatprep.subr.bf16.mxu1 %v1964_v43  ;;  %v2011_v34 = vld [vmem:[#allocation5 + $0x284] ss:$8 sps:$4 sm:$0xff]   ;;  %v2057_v43 = vld [vmem:[#allocation2 + $0x18] ss:$28 sps:$4 sm:$0xff]  }
  0x72   :  { %961 = vmatprep.subr.bf16.mxu0 %v1922_v36  ;;  %v2017_v36 = vld [vmem:[#allocation5 + $0x294] ss:$8 sps:$4 sm:$0xff]  }
  0x74   :  { %887 = vmatpush1.bf16.msra.mxu1 %v1966_v45  ;;  %v2038_v45 = vld [vmem:[#allocation5 + $0x2c4] ss:$8 sps:$4 sm:$0xff]  }
  0x75   :  { %962 = vmatpush1.bf16.msra.mxu0 %v1924_v38  ;;  %888 = vmatprep.subr.bf16.mxu1 %v1970_v47  ;;  %v2015_v38 = vld [vmem:[#allocation5 + $0x290] ss:$8 sps:$4 sm:$0xff]   ;;  %v2041_v47 = vld [vmem:[#allocation5 + $0x2d4] ss:$8 sps:$4 sm:$0xff]  }
  0x76   :  { %963 = vmatprep.subr.bf16.mxu0 %v1928_v40  ;;  %v2222_v40 = vmov 0  }
  0x78   :  { %889 = vmatpush1.bf16.msra.mxu1 %v1972_v49  ;;  %v2039_v49 = vld [vmem:[#allocation5 + $0x2d0] ss:$8 sps:$4 sm:$0xff]  }
  0x79   :  { %964 = vmatpush1.bf16.msra.mxu0 %v1930_v42  ;;  %890 = vmatprep.subr.bf16.mxu1 %v1976_v51  ;;  %v2029_v42 = vld [vmem:[#allocation5 + $0x2b4] ss:$8 sps:$4 sm:$0xff]   ;;  %v2048_v51 = vld [vmem:[#allocation5 + $0x2e0] ss:$8 sps:$4 sm:$0xff]  }
  0x7a   :  { %965 = vmatprep.subr.bf16.mxu0 %v1934_v44  ;;  %v2027_v44 = vld [vmem:[#allocation5 + $0x2b0] ss:$8 sps:$4 sm:$0xff]  }
  0x7c   :  { %891 = vmatpush1.bf16.msra.mxu1 %v1978_v54  ;;  %v2051_v54 = vld [vmem:[#allocation5 + $0x2f0] ss:$8 sps:$4 sm:$0xff]  }
  0x7d   :  { %966 = vmatpush1.bf16.msra.mxu0 %v1936_v46  ;;  %892 = vmatprep.subr.bf16.mxu1 %v1982_v55  ;;  %v2036_v46 = vld [vmem:[#allocation5 + $0x2c0] ss:$8 sps:$4 sm:$0xff]   ;;  %v2054_v55 = vld [vmem:[#allocation2 + $0x10] ss:$28 sps:$4 sm:$0xff]  }
  0x7e   :  { %967 = vmatprep.subr.bf16.mxu0 %v1940_v48  ;;  %v2060_v48 = vld [vmem:[#allocation2 + $0x50] ss:$28 sps:$4 sm:$0xff]  }
  0x80   :  { %893 = vmatpush1.bf16.msra.mxu1 %v1984_v58  ;;  %v2061_v58 = vld [vmem:[#allocation2 + $0x48] ss:$28 sps:$4 sm:$0xff]  }
  0x81   :  { %968 = vmatpush1.bf16.msra.mxu0 %v1942_v50  ;;  %894 = vmatprep.subr.bf16.mxu1 %v1988_v60  ;;  %v2050_v50 = vld [vmem:[#allocation5 + $0x2e4] ss:$8 sps:$4 sm:$0xff]   ;;  %v2065_v60 = vld [vmem:[#allocation2 + $0x80] ss:$28 sps:$4 sm:$0xff]  }
  0x82   :  { %969 = vmatprep.subr.bf16.mxu0 %v1946_v52  ;;  %v2053_v52 = vld [vmem:[#allocation5 + $0x2f4] ss:$8 sps:$4 sm:$0xff]  }
  0x84   :  { %895 = vmatpush1.bf16.msra.mxu1 %v1990_v0  ;;  %v2071_v0 = vld [vmem:[#allocation7] sm:$0xff]  }
  0x85   :  { %970 = vmatpush1.bf16.msra.mxu0 %v1948_v53  ;;  %896 = vmatprep.subr.bf16.mxu1 %v1994_v2  ;;  %v2064_v53 = vld [vmem:[#allocation2 + $0x88] ss:$28 sps:$4 sm:$0xff]   ;;  %v2073_v2 = vld [vmem:[#allocation7 + $0x8] sm:$0xff]  }
  0x86   :  { %971 = vmatprep.subr.bf16.mxu0 %v1952_v57  ;;  %v2068_v57 = vld [vmem:[#allocation2 + $0xc0] ss:$28 sps:$4 sm:$0xff]  }
  0x88   :  { %897 = vmatpush1.bf16.msra.mxu1 %v1996_v4  ;;  %v2075_v4 = vld [vmem:[#allocation7 + $0x10] sm:$0xff]  }
  0x89   :  { %972 = vmatpush1.bf16.msra.mxu0 %v1954_v59  ;;  %898 = vmatprep.subr.bf16.mxu1 %v2000_v6  ;;  %v2062_v59 = vld [vmem:[#allocation2 + $0x84] ss:$28 sps:$4 sm:$0xff]   ;;  %v2077_v6 = vld [vmem:[#allocation7 + $0x18] sm:$0xff]  }
  0x8a   :  { %1014 = vmatprep.subr.bf16.mxu0 %v1963_v61  ;;  %v2066_v61 = vld [vmem:[#allocation2 + $0xbc] ss:$28 sps:$4 sm:$0xff]  }
  0x8c   :  { %974 = vmatmul.mubr.bf16.vlgmr.msra.gmra.mrb[0].mxu0 %v1958_v62  ;;  %899 = vmatpush1.bf16.msra.mxu1 %v2002_v9  ;;  %v2069_v62 = vld [vmem:[#allocation2 + $0xb8] ss:$28 sps:$4 sm:$0xff]  }
  0x8d   :  { %1015 = vmatpush1.bf16.msra.mxu0 %v1961_v63  ;;  %983 = vmatprep.mubr.bf16.mxu0 %v2021_v3  ;;  %v2070_v63 = vld [vmem:[#allocation7 + $0x40] sm:$0xff]   ;;  %v2074_v3 = vld [vmem:[#allocation7 + $0x50] sm:$0xff]   ;;  %v2080_v9 = vld [vmem:[#allocation7 + $0x68] sm:$0xff]  }
  0x8e   :  { %1016 = vmatprep.subr.bf16.mxu0 %v1969_v1  ;;  %1087 = vmatprep.subr.bf16.mxu1 %v2014_v12  ;;  %v2072_v1 = vld [vmem:[#allocation7 + $0x48] sm:$0xff]   ;;  %v2083_v12 = vld [vmem:[#allocation7 + $0x30] sm:$0xff]  }
  0x8f   :  { %901 = vmatmul.mubr.bf16.vlgmr.msra.gmra.mrb[0].mxu1 %v2006_v14  ;;  %v2085_v14 = vld [vmem:[#allocation7 + $0x38] sm:$0xff]  }
  0x90   :  { %1088 = vmatpush1.bf16.msra.mxu1 %v2012_v15  ;;  %910 = vmatprep.mubr.bf16.mxu1 %v2018_v16  ;;  %v2319_v15 = vld [vmem:[#allocation8] sm:$0xff]   ;;  %v2321_v16 = vld [vmem:[#allocation8 + $0x8] sm:$0xff]  }
  0x91   :  { %1017 = vmatpush1.bf16.msra.mxu0 %v1967_v5  ;;  %1715 = vmatprep.subr.bf16.mxu1 %v2070_v63  ;;  %v2076_v5 = vld [vmem:[#allocation7 + $0x58] sm:$0xff]  }
  0x92   :  { %1018 = vmatprep.subr.bf16.mxu0 %v1975_v7  ;;  %v2078_v7 = vld [vmem:[#allocation7 + $0x60] sm:$0xff]  }
  0x94   :  { %984 = vmatmul.mubr.bf16.gmra.mrb[4].mxu0 %v2023_v10  ;;  %v2081_v10 = vld [vmem:[#allocation7 + $0x28] sm:$0xff]  }
  0x95   :  { %1019 = vmatpush1.bf16.msra.mxu0 %v1973_v8  ;;  %993 = vmatprep.mubr.bf16.mxu0 %v2033_v13  ;;  %v2079_v8 = vld [vmem:[#allocation7 + $0x20] sm:$0xff]   ;;  %v2084_v13 = vld [vmem:[#allocation7 + $0x78] sm:$0xff]  }
  0x96   :  { %1020 = vmatprep.subr.bf16.mxu0 %v1981_v11  ;;  %v2082_v11 = vld [vmem:[#allocation7 + $0x70] sm:$0xff]  }
  0x97   :  { %911 = vmatmul.mubr.bf16.gmra.mrb[4].mxu1 %v2020_v23 }
  0x98   :  { %920 = vmatprep.mubr.bf16.mxu1 %v2030_v24 }
  0x99   :  { %1021 = vmatpush1.bf16.msra.mxu0 %v1979_v17  ;;  %v2327_v17 = vld [vmem:[#allocation8 + $0x10] sm:$0xff]  }
  0x9a   :  { %1022 = vmatprep.subr.bf16.mxu0 %v1987_v18 }
  0x9c   :  { %994 = vmatmul.mubr.bf16.gmra.mrb[8].mxu0 %v2035_v20 }
  0x9d   :  { %1023 = vmatpush1.bf16.msra.mxu0 %v1985_v19  ;;  %1003 = vmatprep.mubr.bf16.mxu0 %v2045_v21 }
  0x9e   :  { %1024 = vmatprep.subr.bf16.mxu0 %v1993_v22 }
  0x9f   :  { %921 = vmatmul.mubr.bf16.gmra.mrb[8].mxu1 %v2032_v31 }
  0xa0   :  { %930 = vmatprep.mubr.bf16.mxu1 %v2042_v32 }
  0xa1   :  { %1025 = vmatpush1.bf16.msra.mxu0 %v1991_v25 }
  0xa2   :  { %1026 = vmatprep.subr.bf16.mxu0 %v1999_v26 }
  0xa4   :  { %1004 = vmatmul.mubr.bf16.gmra.mrb[12].mxu0 %v2047_v28 }
  0xa5   :  { %1027 = vmatpush1.bf16.msra.mxu0 %v1997_v27  ;;  %1046 = vmatprep.mubr.bf16.mxu0 %v2056_v29 }
  0xa6   :  { %1028 = vmatprep.subr.bf16.mxu0 %v2005_v30 }
  0xa7   :  { %931 = vmatmul.mubr.bf16.gmra.mrb[12].mxu1 %v2044_v37 }
  0xa8   :  { %1119 = vmatprep.mubr.bf16.mxu1 %v2222_v40 }
  0xa9   :  { %1029 = vmatpush1.bf16.msra.mxu0 %v2003_v33 }
  0xaa   :  { %1030 = vmatprep.subr.bf16.mxu0 %v2011_v34 }
  0xad   :  { %1031 = vmatpush1.bf16.msra.mxu0 %v2009_v35 }
  0xae   :  { %1032 = vmatprep.subr.bf16.mxu0 %v2017_v36 }
  0xaf   :  { %1685 = vmatmul.mubr.msk.bf16.vlgmr.msra.gmra.mrb[16].mxu1 %vm855_vm0, %v2057_v43 }
  0xb0   :  { %1129 = vmatprep.mubr.bf16.mxu1 %v2222_v40  ;;  %1716 = vmatpush3.bf16.msra.mxu1 %v2071_v0 }
  0xb1   :  { %1033 = vmatpush1.bf16.msra.mxu0 %v2015_v38  ;;  %1717 = vmatprep.subr.bf16.mxu1 %v2072_v1  ;;  %v215_v38 = vlaneseq }
  0xb2   :  { %1034 = vmatprep.subr.bf16.mxu0 %v2026_v39 }
  0xb3   :  { %v216_v39 = vshrl.u32 %v215_v38, 7 }
  0xb4   :  { %1718 = vmatpush3.bf16.msra.mxu1 %v2073_v2 }
  0xb5   :  { %1035 = vmatpush1.bf16.msra.mxu0 %v2024_v41  ;;  %1719 = vmatprep.subr.bf16.mxu1 %v2074_v3 }
  0xb6   :  { %1036 = vmatprep.subr.bf16.mxu0 %v2029_v42 }
  0xb7   :  { %1686 = vmatmul.mubr.msk.bf16.gmra.mrb[20].mxu1 %vm855_vm0, %v2060_v48 }
  0xb8   :  { %1139 = vmatprep.mubr.bf16.mxu1 %v2222_v40  ;;  %1720 = vmatpush3.bf16.msra.mxu1 %v2075_v4 }
  0xb9   :  { %1037 = vmatpush1.bf16.msra.mxu0 %v2027_v44  ;;  %1721 = vmatprep.subr.bf16.mxu1 %v2076_v5  ;;  %v217_v44 = vsub.s32 0, %v216_v39 }
  0xba   :  { %1038 = vmatprep.subr.bf16.mxu0 %v2038_v45  ;;  %v213_v45 = vld [vmem:[%s2431_s2] sm:$0x3] }
  0xbc   :  { %1722 = vmatpush3.bf16.msra.mxu1 %v2077_v6 }
  0xbd   :  { %1039 = vmatpush1.bf16.msra.mxu0 %v2036_v46  ;;  %1723 = vmatprep.subr.bf16.mxu1 %v2078_v7  ;;  %v221_v46 = vsub.s32 1, %v216_v39 }
  0xbe   :  { %1040 = vmatprep.subr.bf16.mxu0 %v2041_v47  ;;  %v2351_v47 = vrot.slane %v213_v45, %v217_v44 }
  0xbf   :  { %1687 = vmatmul.mubr.msk.bf16.gmra.mrb[24].mxu1 %vm855_vm0, %v2064_v53 }
  0xc0   :  { %1149 = vmatprep.mubr.bf16.mxu1 %v2222_v40  ;;  %1724 = vmatpush3.bf16.msra.mxu1 %v2079_v8 }
  0xc1   :  { %1041 = vmatpush1.bf16.msra.mxu0 %v2039_v49  ;;  %1725 = vmatprep.subr.bf16.mxu1 %v2080_v9  ;;  %v2355_v49 = vrot.slane %v213_v45, %v221_v46 }
  0xc2   :  { %1042 = vmatprep.subr.bf16.mxu0 %v2050_v50 }
  0xc4   :  { %1726 = vmatpush3.bf16.msra.mxu1 %v2081_v10 }
  0xc5   :  { %1043 = vmatpush1.bf16.msra.mxu0 %v2048_v51  ;;  %1727 = vmatprep.subr.bf16.mxu1 %v2082_v11 }
  0xc6   :  { %1044 = vmatprep.subr.bf16.mxu0 %v2053_v52 }
  0xc7   :  { %1688 = vmatmul.mubr.msk.bf16.gmra.mrb[28].mxu1 %vm855_vm0, %v2068_v57 }
  0xc8   :  { %1728 = vmatpush3.bf16.msra.mxu1 %v2083_v12 }
  0xc9   :  { %1045 = vmatpush1.bf16.msra.mxu0 %v2051_v54  ;;  %1729 = vmatprep.subr.bf16.mxu1 %v2084_v13 }
  0xca   :  { %1767 = vmatprep.subr.bf16.mxu0 %v2319_v15 }
  0xcc   :  { %1047 = vmatmul.mubr.bf16.vlgmr.msra.gmra.mrb[0].mxu0 %v2054_v55  ;;  %1730 = vmatpush3.bf16.msra.mxu1 %v2085_v14 }
  0xcd   :  { %1056 = vmatprep.mubr.bf16.mxu0 %v2058_v56  ;;  %1791 = vmatprep.subr.bf16.mxu1 %v2319_v15 }
  0xce   :  { %1768 = vmatpush3.bf16.msra.mxu0 %v2319_v15 }
  0xcf   :  { %1769 = vmatprep.subr.bf16.mxu0 %v2321_v16 }
  0xd2   :  { %1770 = vmatpush3.bf16.msra.mxu0 %v2321_v16 }
  0xd3   :  { %1771 = vmatprep.subr.bf16.mxu0 %v2327_v17 }
  0xd4   :  { %1057 = vmatmul.mubr.bf16.gmra.mrb[4].mxu0 %v2061_v58 }
  0xd5   :  { %1066 = vmatprep.mubr.bf16.mxu0 %v2062_v59 }
  0xd6   :  { %1772 = vmatpush3.bf16.msra.mxu0 %v2327_v17 }
  0xdc   :  { %1067 = vmatmul.mubr.bf16.gmra.mrb[8].mxu0 %v2065_v60 }
  0xdd   :  { %1076 = vmatprep.mubr.bf16.mxu0 %v2066_v61 }
  0xe4   :  { %1077 = vmatmul.mubr.bf16.gmra.mrb[12].mxu0 %v2069_v62 }
 0x162   :  { %v902_v18 = vpop.f32.mrb[0].mxu1 }
 0x163   :  { %v904_v19 = vpop.f32.mrb[1].mxu1  ;;  %v903_v53 = vadd.f32 %v902_v18, %v2351_v47 }
 0x164   :  { %v906_v20 = vpop.f32.mrb[2].mxu1  ;;  %v905_v54 = vadd.f32 %v904_v19, %v2355_v49 }
 0x165   :  { %v908_v21 = vpop.f32.mrb[3].mxu1  ;;  %v907_v56 = vadd.f32 %v906_v20, %v2351_v47 }
 0x166   :  { %v909_v59 = vadd.f32 %v908_v21, %v2355_v49 }
 0x16a   :  { %v912_v22 = vpop.f32.mrb[4].mxu1 }
 0x16b   :  { %v914_v23 = vpop.f32.mrb[5].mxu1  ;;  %v913_v9 = vadd.f32 %v912_v22, %v2351_v47 }
 0x16c   :  { %v916_v24 = vpop.f32.mrb[6].mxu1  ;;  %v915_v12 = vadd.f32 %v914_v23, %v2355_v49 }
 0x16d   :  { %v918_v25 = vpop.f32.mrb[7].mxu1  ;;  %v917_v19 = vadd.f32 %v916_v24, %v2351_v47 }
 0x172   :  { %v2332_v26 = vpop.f32.mrb[8].mxu1 }
 0x173   :  { %v2334_v27 = vpop.f32.mrb[9].mxu1  ;;  %v923_v24 = vadd.f32 %v2332_v26, %v2351_v47 }
 0x174   :  { %v2336_v28 = vpop.f32.mrb[10].mxu1 }
 0x175   :  { %v2338_v29 = vpop.f32.mrb[11].mxu1 }
 0x17a   :  { %v2340_v30 = vpop.f32.mrb[12].mxu1 }
 0x17b   :  { %v2342_v31 = vpop.f32.mrb[13].mxu1 }
 0x17c   :  { %v2344_v32 = vpop.f32.mrb[14].mxu1 }
 0x17d   :  { %v2346_v33 = vpop.f32.mrb[15].mxu1 }
 0x182   :  { %v1121_v34 = vpop.f32.mrb[16].mxu1 }
 0x183   :  { %v1123_v35 = vpop.f32.mrb[17].mxu1 }
 0x184   :  { %v1125_v36 = vpop.f32.mrb[18].mxu1 }
 0x185   :  { %v1127_v37 = vpop.f32.mrb[19].mxu1 }
 0x18a   :  { %v1131_v40 = vpop.f32.mrb[20].mxu1 }
 0x18b   :  { %v1133_v41 = vpop.f32.mrb[21].mxu1 }
 0x18c   :  { %v1135_v42 = vpop.f32.mrb[22].mxu1 }
 0x18d   :  { %v1137_v43 = vpop.f32.mrb[23].mxu1 }
 0x192   :  { %v2353_v48 = vpop.f32.mrb[24].mxu1 }
 0x193   :  { %v2357_v50 = vpop.f32.mrb[25].mxu1 }
 0x194   :  { %v2359_v51 = vpop.f32.mrb[26].mxu1 }
 0x195   :  { %v2361_v52 = vpop.f32.mrb[27].mxu1 }
 0x19a   :  { %v2367_v1 = vpop.f32.mrb[28].mxu1 }
 0x19b   :  { %v2369_v4 = vpop.f32.mrb[29].mxu1 }
 0x19c   :  { %v2371_v6 = vpop.f32.mrb[30].mxu1 }
 0x19d   :  { %v2373_v8 = vpop.f32.mrb[31].mxu1 }
 0x19f   :  { %v1048_v55 = vpop.f32.mrb[0].mxu0 }
 0x1a0   :  { %v1808_v57 = vadd.f32 %v1048_v55, %v903_v53  ;;  %v1050_v58 = vpop.f32.mrb[1].mxu0 }
 0x1a1   :  { %v1811_v60 = vadd.f32 %v1050_v58, %v905_v54  ;;  %v1052_v61 = vpop.f32.mrb[2].mxu0 }
 0x1a2   :  { %v1809_v62 = vadd.f32 %v1808_v57, %v1121_v34  ;;  %v1814_v63 = vadd.f32 %v1052_v61, %v907_v56  ;;  %v1054_v0 = vpop.f32.mrb[3].mxu0 }
 0x1a3   :  { %v1812_v2 = vadd.f32 %v1811_v60, %v1123_v35  ;;  %v1817_v3 = vadd.f32 %v1054_v0, %v909_v59  ;;  %v919_v35 = vadd.f32 %v918_v25, %v2355_v49  ;;  %v925_v25 = vadd.f32 %v2334_v27, %v2355_v49 }
 0x1a4   :  { %v1815_v5 = vadd.f32 %v1814_v63, %v1125_v36  ;;  %v1160_v10 = vmax.f32 %v1809_v62, 0.0 }
 0x1a5   :  { %v1818_v7 = vadd.f32 %v1817_v3, %v1127_v37  ;;  %v1161_v13 = vmax.f32 %v1812_v2, 0.0  ;;  %v935_v3 = vadd.f32 %v2342_v31, %v2355_v49 }
 0x1a6   :  { %v1162_v11 = vmax.f32 %v1815_v5, 0.0 }
 0x1a7   :  { %v1163_v14 = vmax.f32 %v1818_v7, 0.0  ;;  %v1058_v18 = vpop.f32.mrb[4].mxu0 }
 0x1a8   :  { %v1176_v20 = vpack.c.bf16 %v1162_v11, %v1160_v10  ;;  %v1820_v21 = vadd.f32 %v1058_v18, %v913_v9  ;;  %v1060_v34 = vpop.f32.mrb[5].mxu0  ;;  %v937_v9 = vadd.f32 %v2344_v32, %v2351_v47 }
 0x1a9   :  { %v1823_v36 = vadd.f32 %v1060_v34, %v915_v12  ;;  %v1062_v37 = vpop.f32.mrb[6].mxu0  ;;  %v1177_v38 = vpack.c.bf16 %v1163_v14, %v1161_v13 }
 0x1aa   :  { %v1821_v39 = vadd.f32 %v1820_v21, %v1131_v40  ;;  %v1826_v44 = vadd.f32 %v1062_v37, %v917_v19  ;;  %v1064_v22 = vpop.f32.mrb[7].mxu0 }
 0x1ab   :  { %v1824_v45 = vadd.f32 %v1823_v36, %v1133_v41  ;;  %v1829_v46 = vadd.f32 %v1064_v22, %v919_v35  ;;  %1351 = vmatprep.mubr.bf16.mxu1 %v1177_v38  ;;  %v2093_v36 = vld [vmem:[#allocation8 + $0x38] sm:$0xff]   ;;  %v1689_v38 = vld [vmem:[%s2433_s4] ss:$0 sm:$0xff] }
 0x1ac   :  { %v1827_v23 = vadd.f32 %v1826_v44, %v1135_v42  ;;  %1352 = vmatmul.mubr.bf16.vlgmr.msra.gmra.mrb[32].mxu1 %v1176_v20  ;;  %v1164_v54 = vmax.f32 %v1821_v39, 0.0  ;;  %v927_v42 = vadd.f32 %v2336_v28, %v2351_v47 }
 0x1ad   :  { %v1830_v53 = vadd.f32 %v1829_v46, %v1137_v43  ;;  %1799 = vmatpush3.bf16.msra.mxu1 %v2319_v15  ;;  %v1165_v40 = vmax.f32 %v1824_v45, 0.0  ;;  %v929_v15 = vadd.f32 %v2338_v29, %v2355_v49 }
 0x1ae   :  { %v1166_v55 = vmax.f32 %v1827_v23, 0.0  ;;  %1792 = vmatprep.subr.bf16.mxu1 %v2321_v16 }
 0x1af   :  { %v1167_v56 = vmax.f32 %v1830_v53, 0.0  ;;  %v1068_v41 = vpop.f32.mrb[8].mxu0 }
 0x1b0   :  { %v1832_v57 = vadd.f32 %v1068_v41, %v923_v24  ;;  %v1070_v43 = vpop.f32.mrb[9].mxu0  ;;  %v1178_v58 = vpack.c.bf16 %v1166_v55, %v1164_v54 }
 0x1b1   :  { %v1835_v26 = vadd.f32 %v1070_v43, %v925_v25  ;;  %v1072_v59 = vpop.f32.mrb[10].mxu0  ;;  %v1179_v60 = vpack.c.bf16 %v1167_v56, %v1165_v40  ;;  %1800 = vmatpush3.bf16.msra.mxu1 %v2321_v16  ;;  %v933_v16 = vadd.f32 %v2340_v30, %v2351_v47 }
 0x1b2   :  { %v1833_v61 = vadd.f32 %v1832_v57, %v2353_v48  ;;  %v1838_v27 = vadd.f32 %v1072_v59, %v927_v42  ;;  %v1074_v62 = vpop.f32.mrb[11].mxu0  ;;  %1793 = vmatprep.subr.bf16.mxu1 %v2327_v17 }
 0x1b3   :  { %v1836_v63 = vadd.f32 %v1835_v26, %v2357_v50  ;;  %v1841_v28 = vadd.f32 %v1074_v62, %v929_v15  ;;  %1359 = vmatprep.mubr.bf16.mxu1 %v1179_v60 }
 0x1b4   :  { %v1839_v0 = vadd.f32 %v1838_v27, %v2359_v51  ;;  %1360 = vmatmul.mubr.bf16.gmra.mrb[36].mxu1 %v1178_v58  ;;  %v1168_v2 = vmax.f32 %v1833_v61, 0.0 }
 0x1b5   :  { %v1842_v29 = vadd.f32 %v1841_v28, %v2361_v52  ;;  %1801 = vmatpush3.bf16.msra.mxu1 %v2327_v17  ;;  %v1169_v5 = vmax.f32 %v1836_v63, 0.0  ;;  %v939_v17 = vadd.f32 %v2346_v33, %v2355_v49 }
 0x1b6   :  { %v1170_v48 = vmax.f32 %v1839_v0, 0.0 }
 0x1b7   :  { %v1171_v7 = vmax.f32 %v1842_v29, 0.0  ;;  %v1078_v50 = vpop.f32.mrb[12].mxu0 }
 0x1b8   :  { %v1844_v51 = vadd.f32 %v1078_v50, %v933_v16  ;;  %v1080_v10 = vpop.f32.mrb[13].mxu0  ;;  %v1180_v11 = vpack.c.bf16 %v1170_v48, %v1168_v2 }
 0x1b9   :  { %v1847_v52 = vadd.f32 %v1080_v10, %v935_v3  ;;  %v1082_v12 = vpop.f32.mrb[14].mxu0  ;;  %v1181_v30 = vpack.c.bf16 %v1171_v7, %v1169_v5 }
 0x1ba   :  { %v1845_v13 = vadd.f32 %v1844_v51, %v2367_v1  ;;  %v1850_v14 = vadd.f32 %v1082_v12, %v937_v9  ;;  %v1084_v18 = vpop.f32.mrb[15].mxu0  ;;  %v2089_v1 = vld [vmem:[#allocation8 + $0x18] sm:$0xff]  }
 0x1bb   :  { %v1848_v31 = vadd.f32 %v1847_v52, %v2369_v4  ;;  %v1853_v19 = vadd.f32 %v1084_v18, %v939_v17  ;;  %1367 = vmatprep.mubr.bf16.mxu1 %v1181_v30  ;;  %1773 = vmatprep.subr.bf16.mxu0 %v2089_v1  ;;  %v2090_v4 = vld [vmem:[#allocation8 + $0x20] sm:$0xff]   ;;  %v1706_v30 = vld [vmem:[%s2435_s6] ss:$0 sm:$0xff]  ;;  %s2182_s6 = scalar_lea.vmem %s1546_s13, 1024 }
 0x1bc   :  { %v1851_v20 = vadd.f32 %v1850_v14, %v2371_v6  ;;  %1368 = vmatmul.mubr.bf16.gmra.mrb[40].mxu1 %v1180_v11  ;;  %v1172_v47 = vmax.f32 %v1845_v13, 0.0  ;;  %1794 = vmatprep.subr.bf16.mxu1 %v2089_v1  ;;  %v2091_v6 = vld [vmem:[#allocation8 + $0x28] sm:$0xff]   ;;  %p2183_p4 = scmp.ne.s32.totalorder %s1546_s13, %s2182_s6  ;;  %p2188_p6 = scmp.lt.s32.totalorder %s2182_s6, %s2182_s6 }
 0x1bd   :  { %v1854_v32 = vadd.f32 %v1853_v19, %v2373_v8  ;;  %v1173_v34 = vmax.f32 %v1848_v31, 0.0  ;;  %1774 = vmatpush3.bf16.msra.mxu0 %v2089_v1  ;;  %1802 = vmatpush3.bf16.msra.mxu1 %v2089_v1  ;;  %v2092_v8 = vld [vmem:[#allocation8 + $0x30] sm:$0xff]  }
 0x1be   :  { %v1174_v21 = vmax.f32 %v1851_v20, 0.0  ;;  %1775 = vmatprep.subr.bf16.mxu0 %v2090_v4  ;;  %1795 = vmatprep.subr.bf16.mxu1 %v2090_v4  ;;  %p2189_p7 = por %p2188_p6, %p2187_p5 }
 0x1bf   :  { %v1175_v33 = vmax.f32 %v1854_v32, 0.0 }
 0x1c0   :  { %v1182_v49 = vpack.c.bf16 %v1174_v21, %v1172_v47  ;;  %p2190_p8 = pnand %p2189_p7, %p2183_p4 }
 0x1c1   :  { %v1183_v35 = vpack.c.bf16 %v1175_v33, %v1173_v34  ;;  %1776 = vmatpush3.bf16.msra.mxu0 %v2090_v4  ;;  %1803 = vmatpush3.bf16.msra.mxu1 %v2090_v4 }
 0x1c2   :  { %1777 = vmatprep.subr.bf16.mxu0 %v2091_v6  ;;  %1796 = vmatprep.subr.bf16.mxu1 %v2091_v6 }
 0x1c3   :  { %1375 = vmatprep.mubr.bf16.mxu1 %v1183_v35 }
 0x1c4   :  { %1376 = vmatmul.mubr.bf16.gmra.mrb[44].mxu1 %v1182_v49 }
 0x1c5   :  { %1778 = vmatpush3.bf16.msra.mxu0 %v2091_v6  ;;  %1804 = vmatpush3.bf16.msra.mxu1 %v2091_v6 }
 0x1c6   :  { %1779 = vmatprep.subr.bf16.mxu0 %v2092_v8  ;;  %1797 = vmatprep.subr.bf16.mxu1 %v2092_v8 }
 0x1c9   :  { %1780 = vmatpush3.bf16.msra.mxu0 %v2092_v8  ;;  %1805 = vmatpush3.bf16.msra.mxu1 %v2092_v8 }
 0x1ca   :  { %1781 = vmatprep.subr.bf16.mxu0 %v2093_v36  ;;  %1798 = vmatprep.subr.bf16.mxu1 %v2093_v36 }
 0x1cd   :  { %1782 = vmatpush3.bf16.msra.mxu0 %v2093_v36  ;;  %1806 = vmatpush3.bf16.msra.mxu1 %v2093_v36 }
 0x27f   :  { %v1731_v37 = vpop.f32.mrb[32].mxu1 }
 0x280   :  { %v1732_v39 = vpop.f32.mrb[33].mxu1 }
 0x281   :  { %v1733_v44 = vadd.f32 %v1732_v39, %v1731_v37  ;;  %v1734_v22 = vpop.f32.mrb[34].mxu1 }
 0x282   :  { %v1735_v45 = vpop.f32.mrb[35].mxu1 }
 0x283   :  { %v1354_v46 = vadd.f32 %v1733_v44, %v1689_v38  ;;  %v1736_v23 = vadd.f32 %v1735_v45, %v1734_v22 }
 0x285   :  { %v1357_v53 = vadd.f32 %v1736_v23, %v1689_v38  ;;  %v1384_v24 = vmax.f32 %v1354_v46, 0.0 }
 0x287   :  { %v1385_v54 = vmax.f32 %v1357_v53, 0.0  ;;  %v1737_v55 = vpop.f32.mrb[36].mxu1 }
 0x288   :  { %v1738_v25 = vpop.f32.mrb[37].mxu1 }
 0x289   :  { %v1739_v40 = vadd.f32 %v1738_v25, %v1737_v55  ;;  %v1740_v56 = vpop.f32.mrb[38].mxu1  ;;  %v1392_v41 = vpack.c.bf16 %v1385_v54, %v1384_v24 }
 0x28a   :  { %v1741_v42 = vpop.f32.mrb[39].mxu1 }
 0x28b   :  { %v1362_v57 = vadd.f32 %v1739_v40, %v1689_v38  ;;  %v1742_v43 = vadd.f32 %v1741_v42, %v1740_v56  ;;  %1783 = vmatprep.mubr.bf16.mxu0 %v1392_v41 }
 0x28d   :  { %v1365_v58 = vadd.f32 %v1742_v43, %v1689_v38  ;;  %v1386_v15 = vmax.f32 %v1362_v57, 0.0 }
 0x28f   :  { %v1387_v26 = vmax.f32 %v1365_v58, 0.0  ;;  %v1743_v59 = vpop.f32.mrb[40].mxu1 }
 0x290   :  { %v1744_v60 = vpop.f32.mrb[41].mxu1 }
 0x291   :  { %v1393_v61 = vpack.c.bf16 %v1387_v26, %v1386_v15  ;;  %v1745_v27 = vadd.f32 %v1744_v60, %v1743_v59  ;;  %v1746_v62 = vpop.f32.mrb[42].mxu1 }
 0x292   :  { %v1747_v63 = vpop.f32.mrb[43].mxu1 }
 0x293   :  { %v1370_v28 = vadd.f32 %v1745_v27, %v1689_v38  ;;  %v1748_v0 = vadd.f32 %v1747_v63, %v1746_v62  ;;  %1784 = vmatmul.mubr.bf16.vlgmr.msra.gmra.mrb[16].mxu0 %v1393_v61 }
 0x295   :  { %v1373_v29 = vadd.f32 %v1748_v0, %v1689_v38  ;;  %v1388_v16 = vmax.f32 %v1370_v28, 0.0 }
 0x297   :  { %v1389_v2 = vmax.f32 %v1373_v29, 0.0  ;;  %v1749_v48 = vpop.f32.mrb[44].mxu1 }
 0x298   :  { %v1750_v3 = vpop.f32.mrb[45].mxu1 }
 0x299   :  { %v1751_v5 = vadd.f32 %v1750_v3, %v1749_v48  ;;  %v1752_v7 = vpop.f32.mrb[46].mxu1  ;;  %v1394_v50 = vpack.c.bf16 %v1389_v2, %v1388_v16 }
 0x29a   :  { %v1753_v9 = vpop.f32.mrb[47].mxu1 }
 0x29b   :  { %v1378_v51 = vadd.f32 %v1751_v5, %v1689_v38  ;;  %v1754_v10 = vadd.f32 %v1753_v9, %v1752_v7  ;;  %1787 = vmatprep.mubr.bf16.mxu1 %v1394_v50 }
 0x29d   :  { %v1381_v11 = vadd.f32 %v1754_v10, %v1689_v38  ;;  %v1390_v17 = vmax.f32 %v1378_v51, 0.0 }
 0x29f   :  { %v1391_v52 = vmax.f32 %v1381_v11, 0.0 }
 0x2a1   :  { %v1395_v12 = vpack.c.bf16 %v1391_v52, %v1390_v17 }
 0x2a3   :  { %1788 = vmatmul.mubr.bf16.vlgmr.msra.gmra.mrb[48].mxu1 %v1395_v12 }
 0x366   :  { %v1785_v13 = vpop.f32.mrb[16].mxu0 }
 0x367   :  { %v1510_v14 = vadd.f32 %v1785_v13, %v1706_v30  ;;  %v1501_v18 = vpop.f32.mrb[17].mxu0 }
 0x368   :  { %v1502_v31 = vadd.f32 %v1706_v30, %v1501_v18  ;;  %v1786_v19 = vpop.f32.mrb[18].mxu0 }
 0x369   :  { %1534 = vst [vmem:[#allocation10 + $0x10] sm:$0xff] %v1510_v14  ;;  %v1513_v20 = vadd.f32 %v1786_v19, %v1706_v30  ;;  %v1504_v32 = vpop.f32.mrb[19].mxu0 }
 0x36a   :  { %1532 = vst [vmem:[#allocation10] sm:$0xff] %v1502_v31  ;;  %v1505_v47 = vadd.f32 %v1706_v30, %v1504_v32 }
 0x36b   :  { %1535 = vst [vmem:[#allocation10 + $0x18] sm:$0xff] %v1513_v20 }
 0x36c   :  { %1533 = vst [vmem:[#allocation10 + $0x8] sm:$0xff] %v1505_v47 }
 0x376   :  { %v1789_v21 = vpop.f32.mrb[48].mxu1 }
 0x377   :  { %v1526_v34 = vadd.f32 %v1789_v21, %v1706_v30  ;;  %v1517_v33 = vpop.f32.mrb[49].mxu1 }
 0x378   :  { %v1518_v49 = vadd.f32 %v1706_v30, %v1517_v33  ;;  %v1790_v35 = vpop.f32.mrb[50].mxu1 }
 0x379   :  { %1538 = vst [vmem:[#allocation10 + $0x30] sm:$0xff] %v1526_v34  ;;  %v1529_v1 = vadd.f32 %v1790_v35, %v1706_v30  ;;  %v1520_v4 = vpop.f32.mrb[51].mxu1 }
 0x37a   :  { %1536 = vst [vmem:[#allocation10 + $0x20] sm:$0xff] %v1518_v49  ;;  %v1521_v6 = vadd.f32 %v1706_v30, %v1520_v4 }
 0x37b   :  { %1539 = vst [vmem:[#allocation10 + $0x38] sm:$0xff] %v1529_v1 }
 0x37c   :  { %1537 = vst [vmem:[#allocation10 + $0x28] sm:$0xff] %v1521_v6 }
 0x37d   :  { %2193 = shalt.err (!%p2190_p8)
}
 0x37e   :  { %s2194_s17 = scalar_lea.hbm %s2436_s7, 1024 }
 0x37f   :  { %p2195_p9 = scmp.ne.s32.totalorder %s2436_s7, %s2194_s17  ;;  %p2198_p10 = scmp.lt.u32.totalorder %s2194_s17, %s2436_s7 }
 0x381   :  { %p2200_p11 = pnand %p2198_p10, %p2195_p9 }
 0x383   :  { %2203 = shalt.err (!%p2200_p11)
}
 0x384   :  { %1551 = dma.vmem_to_hbm [thread:$0]  %s1546_s13, 1024, %s2436_s7, [#allocation4], %s2213_s11, %s2213_s11, %s2214_s12  }
 0x385   :  { %2210 = dma.done.wait [#allocation4], 1024  }
 0x386   :  { %2211 = vsyncadd [#allocation4], 4294966272 }
 0x387   :  { %1555 = vsyncpa [#allocation3], 1 }
 0x388   :  { %1556 = vsyncpa [#allocation6], 1 }
 0x389   :  { %1557 = vsyncpa [#allocation9], 1 }
 0x38a   :  { %1558 = vsyncpa [#allocation4], 1 }

</bundles_post_ra>
